<compile_context>
chip_gen: v5e
topology: v5e:2x2
jax: 0.10.0
libtpu: 0.0.40
codegen_flags: <defaults>
</compile_context>

<pallas_src>
import functools

import jax
import jax.numpy as jnp
import numpy as np
from jax.experimental import pallas as pl
from jax.experimental.pallas import tpu as pltpu

K = 5    # conv kernel size (self.k)
C1 = 32  # conv1 output channels


def _round_up(a, b):
    return (a + b - 1) // b * b


def _cnn_kernel(x_ref, w1p_ref, b1_ref, wf_ref, bf_ref, o_ref):
    # x_ref:   (TB, E+4)   f32 'same'-padded inputs, batch on sublanes
    # w1p_ref: (E+4, K*m)  bf16 banded conv1 weights, column = (r*n + q)*C1 + c
    # b1_ref:  (1, m)      f32 conv1 bias tiled per (q, c) column (r-invariant)
    # wf_ref:  (m, EP)     bf16 fused conv2 @ Linear weights, lane-padded to EP
    # bf_ref:  (1, EP)     f32 fused bias (bl + b2 * sum_q wl.T[q, :], padded)
    # o_ref:   (TB, EP)    f32 lane-dense output slab
    m = wf_ref.shape[0]                                               # n * C1

    x = x_ref[...].astype(jnp.bfloat16)                               # (TB, E+4)

    # ---- Conv1d(1,32,5,'same') fused with MaxPool1d(5): one bf16 MXU matmul
    # per pooling tap r (128-aligned static lane slice of W1p), folded into a
    # running max -> never materializes the (TB, K*m) tensor. -------------
    pooled = jnp.dot(x, w1p_ref[:, 0:m],
                     preferred_element_type=jnp.float32)              # (TB, m) f32
    for r in range(1, K):
        yr = jnp.dot(x, w1p_ref[:, r * m:(r + 1) * m],
                     preferred_element_type=jnp.float32)
        pooled = jnp.maximum(pooled, yr)

    # Conv1 bias is invariant over r, so max(y + b) == max(y) + b: add once here.
    pooled = pooled + b1_ref[...]                                      # (TB, m) f32

    # ---- Conv1d(32,1,5,'same') + Linear(n,E) + both biases: one bf16 matmul --
    z = jnp.dot(pooled.astype(jnp.bfloat16), wf_ref[...],
                preferred_element_type=jnp.float32) + bf_ref[...]      # (TB, EP)
    o_ref[...] = jax.nn.sigmoid(z)


@functools.partial(jax.jit, static_argnames=("block_b",))
def cnn_forward(x, w1, b1, w2, b2, wl, bl, block_b=256):
    """x: (B, 1, E) float32, NCW (same as the PyTorch module). Returns (B, 1, E)."""
    B, _, E = x.shape
    n = (E - K) // K + 1
    m = n * C1
    EP = _round_up(E, 128)        # lane-dense output width (unmasked vst)

    # ---- batch tiling: TB rows per grid step; keep >=2 grid steps when the
    # batch allows so the 'parallel' axis can shard across both v7x TCs. -----
    Bp8 = _round_up(B, 8)
    TB = min(_round_up(block_b, 8), Bp8)
    if Bp8 >= 16:
        TB = min(TB, _round_up(Bp8 // 2, 8))
    Bp = _round_up(B, TB)

    # ---- glue: 'same' spatial padding (+ batch padding), batch on sublanes --
    xp = jnp.pad(x[:, 0, :], ((0, Bp - B), (2, 2)))                    # (Bp, E+4)

    # ---- glue: parameter re-layout (tiny, once per call). NOTE: if the
    # parameters are frozen across many calls, hoist this block out and pass
    # w1p/b1p/wf/bf to the kernel directly. -----------------------------------
    # Banded conv1 matrix: W1p[i, (r*n+q)*C1 + c] = w1[c, 0, i - (5q+r)] if tap valid.
    pos = (5 * jnp.arange(n)[None, :, None]
           + jnp.arange(K)[:, None, None]
           + jnp.arange(K)[None, None, :])                             # (r,q,j) -> 5q+r+j
    row_onehot = (pos[..., None] == jnp.arange(E + 4)).astype(jnp.float32)  # (K,n,K,E+4)
    w1p = jnp.einsum('rqji,cj->irqc', row_onehot,
                     w1[:, 0, :]).reshape(E + 4, K * m)                # (E+4, K*n*C1)
    w1p = w1p.astype(jnp.bfloat16)
    b1p = jnp.tile(b1, n).reshape(1, m)                                # (1, n*C1) f32

    # Conv2 as a (n*C1, n) matrix, then fold Linear(n, E) + biases into it.
    dq = jnp.arange(n)[:, None] - jnp.arange(n)[None, :] + 2           # tap j = q - p + 2
    valid = (dq >= 0) & (dq < K)
    w2full = jnp.where(valid[None, :, :],
                       w2[0][:, jnp.clip(dq, 0, K - 1)], 0.0)          # (C1,n,n) [c,q,p]
    w2mat = jnp.transpose(w2full, (1, 0, 2)).reshape(m, n)             # (q*C1+c, p)
    wlT = jnp.transpose(wl)                                            # (n, E)
    wf = jnp.dot(w2mat, wlT, preferred_element_type=jnp.float32)       # (n*C1, E)
    wf = jnp.pad(wf, ((0, 0), (0, EP - E))).astype(jnp.bfloat16)       # (n*C1, EP)
    bf = jnp.pad((bl + b2[0] * jnp.sum(wlT, axis=0)).reshape(1, E),
                 ((0, 0), (0, EP - E)))                                # (1, EP) f32

    out2 = pl.pallas_call(
        _cnn_kernel,
        out_shape=jax.ShapeDtypeStruct((Bp, EP), jnp.float32),
        grid=(Bp // TB,),
        in_specs=[
            pl.BlockSpec((TB, E + 4), lambda i: (i, 0)),
            pl.BlockSpec((E + 4, K * m), lambda i: (0, 0)),
            pl.BlockSpec((1, m), lambda i: (0, 0)),
            pl.BlockSpec((m, EP), lambda i: (0, 0)),
            pl.BlockSpec((1, EP), lambda i: (0, 0)),
        ],
        out_specs=pl.BlockSpec((TB, EP), lambda i: (i, 0)),
        compiler_params=pltpu.CompilerParams(dimension_semantics=("parallel",)),
    )(xp, w1p, b1p, wf, bf)
    return out2[:B, :E].reshape(B, 1, E)


def ref_forward(x, w1, b1, w2, b2, wl, bl):
    """Pure-JAX f32 reference matching PyTorch semantics."""
    B, _, E = x.shape
    n = (E - K) // K + 1
    xp = jnp.pad(x[:, 0, :], ((0, 0), (2, 2)))
    g = xp[:, jnp.arange(E)[:, None] + jnp.arange(K)[None, :]]          # (B, E, K)
    y = jnp.einsum('bij,cj->bci', g, w1[:, 0, :]) + b1[None, :, None]   # (B, C1, E)
    pooled = y[:, :, :K * n].reshape(B, C1, n, K).max(-1)               # (B, C1, n)
    pp = jnp.pad(pooled, ((0, 0), (0, 0), (2, 2)))
    gp = pp[:, :, jnp.arange(n)[:, None] + jnp.arange(K)[None, :]]      # (B, C1, n, K)
    z = jnp.einsum('bcpj,cj->bp', gp, w2[0]) + b2[0]                    # (B, n)
    out = jax.nn.sigmoid(z @ wl.T + bl[None, :])                        # (B, E)
    return out[:, None, :]


if __name__ == "__main__":
    E = 40                               # embed_dim
    n = (E - K) // K + 1                 # n_channels after c1 = 8

    key = jax.random.PRNGKey(0)
    k0, k1, k2, k3, k4, k5, k6 = jax.random.split(key, 7)
    # deterministic synthetic parameters with the module's shapes
    w1 = 0.2 * jax.random.normal(k1, (C1, 1, K), jnp.float32)   # Conv1d(1, 32, 5)
    b1 = 0.1 * jax.random.normal(k2, (C1,), jnp.float32)
    w2 = 0.2 * jax.random.normal(k3, (1, C1, K), jnp.float32)   # Conv1d(32, 1, 5)
    b2 = 0.1 * jax.random.normal(k4, (1,), jnp.float32)
    wl = 0.3 * jax.random.normal(k5, (E, n), jnp.float32)       # Linear(n, E)
    bl = 0.1 * jax.random.normal(k6, (E,), jnp.float32)

    # bf16 MXU operands with f32 accumulation vs pure-f32 reference.
    TOL = dict(rtol=1e-2, atol=1e-2)

    # small batch: single grid step
    x = jax.random.normal(k0, (2, 1, E), jnp.float32)
    out = cnn_forward(x, w1, b1, w2, b2, wl, bl)
    jax.block_until_ready(out)
    np.testing.assert_allclose(np.asarray(out),
                               np.asarray(ref_forward(x, w1, b1, w2, b2, wl, bl)),
                               **TOL)

    # B=20, default block: TB capped to 16 -> 2 parallel grid steps + batch padding
    xb = jax.random.normal(k0, (20, 1, E), jnp.float32)
    outb = cnn_forward(xb, w1, b1, w2, b2, wl, bl)
    jax.block_until_ready(outb)
    np.testing.assert_allclose(np.asarray(outb),
                               np.asarray(ref_forward(xb, w1, b1, w2, b2, wl, bl)),
                               **TOL)

    # B=20, block_b=8 -> 3 grid steps
    outc = cnn_forward(xb, w1, b1, w2, b2, wl, bl, block_b=8)
    jax.block_until_ready(outc)
    np.testing.assert_allclose(np.asarray(outc),
                               np.asarray(ref_forward(xb, w1, b1, w2, b2, wl, bl)),
                               **TOL)

    print("KERNEL_OK")
</pallas_src>

<mosaic_0001>
module attributes {stable_mosaic.version = 11 : i64} {
  func.func @_cnn_kernel(%arg0: i32, %arg1: memref<8x44xf32, #tpu.memory_space<vmem>>, %arg2: memref<44x1280xbf16, #tpu.memory_space<vmem>>, %arg3: memref<1x256xf32, #tpu.memory_space<vmem>>, %arg4: memref<256x128xbf16, #tpu.memory_space<vmem>>, %arg5: memref<1x128xf32, #tpu.memory_space<vmem>>, %arg6: memref<8x128xf32, #tpu.memory_space<vmem>>) attributes {dimension_semantics = [#tpu.dimension_semantics<parallel>], iteration_bounds = array<i64: 1>, scalar_prefetch = 0 : i64, scratch_operands = 0 : i64, tpu.core_type = #tpu.core_type<tc>, window_params = [{transform_indices = @transform_0, window_bounds = array<i64: 8, 44>}, {pipeline_mode = #tpu.pipeline_mode<synchronous>, transform_indices = @transform_1, window_bounds = array<i64: 44, 1280>}, {pipeline_mode = #tpu.pipeline_mode<synchronous>, transform_indices = @transform_2, window_bounds = array<i64: 1, 256>}, {pipeline_mode = #tpu.pipeline_mode<synchronous>, transform_indices = @transform_3, window_bounds = array<i64: 256, 128>}, {pipeline_mode = #tpu.pipeline_mode<synchronous>, transform_indices = @transform_4, window_bounds = array<i64: 1, 128>}, {transform_indices = @transform_5, window_bounds = array<i64: 8, 128>}]} {
    %c0 = arith.constant 0 : index
    %c0_0 = arith.constant 0 : index
    %0 = vector.load %arg1[%c0, %c0_0] : memref<8x44xf32, #tpu.memory_space<vmem>>, vector<8x44xf32>
    %1 = arith.truncf %0 : vector<8x44xf32> to vector<8x44xbf16>
    %c0_1 = arith.constant 0 : index
    %c0_2 = arith.constant 0 : index
    %2 = vector.load %arg2[%c0_1, %c0_2] : memref<44x1280xbf16, #tpu.memory_space<vmem>>, vector<44x256xbf16>
    %cst = arith.constant dense<0.000000e+00> : vector<8x256xf32>
    %3 = tpu.matmul %1, %2, %cst {dimension_numbers = #tpu.dot_dimension_numbers<[1], [0], [0], [1], [0, 0, 1, 1], [], []>} : vector<8x44xbf16>, vector<44x256xbf16>, vector<8x256xf32> -> vector<8x256xf32>
    %c0_3 = arith.constant 0 : index
    %c256 = arith.constant 256 : index
    %4 = vector.load %arg2[%c0_3, %c256] : memref<44x1280xbf16, #tpu.memory_space<vmem>>, vector<44x256xbf16>
    %cst_4 = arith.constant dense<0.000000e+00> : vector<8x256xf32>
    %5 = tpu.matmul %1, %4, %cst_4 {dimension_numbers = #tpu.dot_dimension_numbers<[1], [0], [0], [1], [0, 0, 1, 1], [], []>} : vector<8x44xbf16>, vector<44x256xbf16>, vector<8x256xf32> -> vector<8x256xf32>
    %6 = arith.maximumf %3, %5 : vector<8x256xf32>
    %c0_5 = arith.constant 0 : index
    %c512 = arith.constant 512 : index
    %7 = vector.load %arg2[%c0_5, %c512] : memref<44x1280xbf16, #tpu.memory_space<vmem>>, vector<44x256xbf16>
    %cst_6 = arith.constant dense<0.000000e+00> : vector<8x256xf32>
    %8 = tpu.matmul %1, %7, %cst_6 {dimension_numbers = #tpu.dot_dimension_numbers<[1], [0], [0], [1], [0, 0, 1, 1], [], []>} : vector<8x44xbf16>, vector<44x256xbf16>, vector<8x256xf32> -> vector<8x256xf32>
    %9 = arith.maximumf %6, %8 : vector<8x256xf32>
    %c0_7 = arith.constant 0 : index
    %c768 = arith.constant 768 : index
    %10 = vector.load %arg2[%c0_7, %c768] : memref<44x1280xbf16, #tpu.memory_space<vmem>>, vector<44x256xbf16>
    %cst_8 = arith.constant dense<0.000000e+00> : vector<8x256xf32>
    %11 = tpu.matmul %1, %10, %cst_8 {dimension_numbers = #tpu.dot_dimension_numbers<[1], [0], [0], [1], [0, 0, 1, 1], [], []>} : vector<8x44xbf16>, vector<44x256xbf16>, vector<8x256xf32> -> vector<8x256xf32>
    %12 = arith.maximumf %9, %11 : vector<8x256xf32>
    %c0_9 = arith.constant 0 : index
    %c1024 = arith.constant 1024 : index
    %13 = vector.load %arg2[%c0_9, %c1024] : memref<44x1280xbf16, #tpu.memory_space<vmem>>, vector<44x256xbf16>
    %cst_10 = arith.constant dense<0.000000e+00> : vector<8x256xf32>
    %14 = tpu.matmul %1, %13, %cst_10 {dimension_numbers = #tpu.dot_dimension_numbers<[1], [0], [0], [1], [0, 0, 1, 1], [], []>} : vector<8x44xbf16>, vector<44x256xbf16>, vector<8x256xf32> -> vector<8x256xf32>
    %15 = arith.maximumf %12, %14 : vector<8x256xf32>
    %c0_11 = arith.constant 0 : index
    %c0_12 = arith.constant 0 : index
    %16 = vector.load %arg3[%c0_11, %c0_12] : memref<1x256xf32, #tpu.memory_space<vmem>>, vector<1x256xf32>
    %17 = vector.broadcast %16 : vector<1x256xf32> to vector<8x256xf32>
    %18 = arith.addf %15, %17 : vector<8x256xf32>
    %19 = arith.truncf %18 : vector<8x256xf32> to vector<8x256xbf16>
    %c0_13 = arith.constant 0 : index
    %c0_14 = arith.constant 0 : index
    %20 = vector.load %arg4[%c0_13, %c0_14] : memref<256x128xbf16, #tpu.memory_space<vmem>>, vector<256x128xbf16>
    %cst_15 = arith.constant dense<0.000000e+00> : vector<8x128xf32>
    %21 = tpu.matmul %19, %20, %cst_15 {dimension_numbers = #tpu.dot_dimension_numbers<[1], [0], [0], [1], [0, 0, 1, 1], [], []>} : vector<8x256xbf16>, vector<256x128xbf16>, vector<8x128xf32> -> vector<8x128xf32>
    %c0_16 = arith.constant 0 : index
    %c0_17 = arith.constant 0 : index
    %22 = vector.load %arg5[%c0_16, %c0_17] : memref<1x128xf32, #tpu.memory_space<vmem>>, vector<1x128xf32>
    %23 = vector.broadcast %22 : vector<1x128xf32> to vector<8x128xf32>
    %24 = arith.addf %21, %23 : vector<8x128xf32>
    %25 = arith.negf %24 : vector<8x128xf32>
    %26 = math.exp %25 : vector<8x128xf32>
    %cst_18 = arith.constant 1.000000e+00 : f32
    %27 = vector.broadcast %cst_18 : f32 to vector<8x128xf32>
    %28 = arith.addf %27, %26 : vector<8x128xf32>
    %29 = arith.divf %27, %28 : vector<8x128xf32>
    %c0_19 = arith.constant 0 : index
    %c0_20 = arith.constant 0 : index
    %30 = vector.load %arg6[%c0_19, %c0_20] : memref<8x128xf32, #tpu.memory_space<vmem>>, vector<8x128xf32>
    tpu.vector_store %arg6[%c0_19, %c0_20], %29 {strides = array<i32>} : memref<8x128xf32, #tpu.memory_space<vmem>>, vector<8x128xf32>,
    return
  }
  func.func @transform_0(%arg0: i32) -> (i32, i32) {
    %c0_i32 = arith.constant 0 : i32
    %c0_i32_0 = arith.constant 0 : i32
    return %arg0, %c0_i32 : i32, i32
  }
  func.func @transform_1(%arg0: i32) -> (i32, i32) {
    %c0_i32 = arith.constant 0 : i32
    %c0_i32_0 = arith.constant 0 : i32
    %c0_i32_1 = arith.constant 0 : i32
    return %c0_i32, %c0_i32_0 : i32, i32
  }
  func.func @transform_2(%arg0: i32) -> (i32, i32) {
    %c0_i32 = arith.constant 0 : i32
    %c0_i32_0 = arith.constant 0 : i32
    %c0_i32_1 = arith.constant 0 : i32
    return %c0_i32, %c0_i32_0 : i32, i32
  }
  func.func @transform_3(%arg0: i32) -> (i32, i32) {
    %c0_i32 = arith.constant 0 : i32
    %c0_i32_0 = arith.constant 0 : i32
    %c0_i32_1 = arith.constant 0 : i32
    return %c0_i32, %c0_i32_0 : i32, i32
  }
  func.func @transform_4(%arg0: i32) -> (i32, i32) {
    %c0_i32 = arith.constant 0 : i32
    %c0_i32_0 = arith.constant 0 : i32
    %c0_i32_1 = arith.constant 0 : i32
    return %c0_i32, %c0_i32_0 : i32, i32
  }
  func.func @transform_5(%arg0: i32) -> (i32, i32) {
    %c0_i32 = arith.constant 0 : i32
    %c0_i32_0 = arith.constant 0 : i32
    return %arg0, %c0_i32 : i32, i32
  }
}

</mosaic_0001>

<bundles_post_ra>
// kernel: tile.8
= control target key start
LH: loop header
LB: loop body
LE: loop exit
PB: predicated region body
PF: predicated region fallthrough
CT: control target
= control target key end

     0   :  { %s22_s0 = inlined_call_operand.vmem [shape: f32[32], index: 0, kind: input, shape index: {}]   ;;  %s23_s1 = inlined_call_operand.vmem [shape: f32[8,32], index: 1, kind: output, shape index: {}]  }
   0x1   :  { %v4_v0 = vld [vmem:[%s22_s0] ss:$0 sm:$0xff] }
   0x2   :  { %5 = vst [vmem:[%s23_s1] sm:$0xff] %v4_v0 }

// kernel: tile.9
= control target key start
LH: loop header
LB: loop body
LE: loop exit
PB: predicated region body
PF: predicated region fallthrough
CT: control target
= control target key end

     0   :  { %s7_s6 = smov 3  ;;  %s46_s9 = smov 96   ;;  %vm4_vm0 = vcmask 261120   ;;  %vm11_vm1 = vcmask 1048320   ;;  %vm18_vm2 = vcmask 785920   ;;  %vm25_vm3 = vcmask 523520   ;;  %s77_s0 = inlined_call_operand.vmem [shape: f32[8,32], index: 0, kind: input, shape index: {}]   ;;  %s78_s1 = inlined_call_operand.vmem [shape: f32[1,256], index: 1, kind: output, shape index: {}]  }
   0x1   :  { %v39_v0 = vld [vmem:[%s77_s0 + $0x3] ss:$4 sm:%s7_s6]   ;;  %s21_s10 = smov 3  ;;  %s14_s13 = smov 3 }
   0x2   :  { %9 = vrot.lane.b32.xlu0 %v39_v0, %s46_s9  ;;  %v41_v1 = vld [vmem:[%s77_s0 + $0x1] ss:$4 sm:%s21_s10]   ;;  %s47_s14 = smov 32   ;;  %s48_s17 = smov 64  }
   0x3   :  { %23 = vrot.lane.b32.xlu1 %v41_v1, %s47_s14  ;;  %v40_v2 = vld [vmem:[%s77_s0 + $0x2] ss:$4 sm:%s14_s13]   ;;  %s2_s18 = smov 3 }
   0x4   :  { %v3_v3 = vld [vmem:[%s77_s0] ss:$4 sm:%s2_s18]  }
   0x5   :  { %5 = vst.msk [vmem:[#allocation0] ss:$8 sm:$0x3] %vm4_vm0, %v3_v3  }
   0xa   :  { %16 = vrot.lane.b32.xlu0 %v40_v2, %s48_s17 }
  0x74   :  { %v10_v4 = vpop.permute.xlu0 %9  }
  0x75   :  { %12 = vst.msk [vmem:[#allocation0] ss:$8 sm:$0x3] %vm11_vm1, %v10_v4   ;;  %v24_v5 = vpop.permute.xlu1 %23  }
  0x7c   :  { %v17_v6 = vpop.permute.xlu0 %16  }
  0x7d   :  { %19 = vst.msk [vmem:[#allocation0] ss:$8 sm:$0x3] %vm18_vm2, %v17_v6  }
  0x7e   :  { %26 = vst.msk [vmem:[#allocation0] ss:$8 sm:$0x3] %vm25_vm3, %v24_v5  }
  0x85   :  { %v29_v7 = vld [vmem:[#allocation0] sm:$0x1]  ;;  %v34_v8 = vld [vmem:[#allocation0 + $0x8] sm:$0x1] }
  0x86   :  { %32 = vst [vmem:[%s78_s1] sm:$0x1] %v29_v7 }
  0x87   :  { %42 = vst [vmem:[%s78_s1 + $0x1] sm:$0x1] %v34_v8 }

// kernel: cnn_forward.1
= control target key start
LH: loop header
LB: loop body
LE: loop exit
PB: predicated region body
PF: predicated region fallthrough
CT: control target
= control target key end

     0   :  { %vm61_vm0 = vcmask 1045504   ;;  %vm57_vm1 = vcmask 359424   ;;  %s1106_s1 = inlined_call_operand.vmem [shape: bf16[44,1280], index: 1, kind: input, shape index: {}]   ;;  %s1107_s0 = inlined_call_operand.vmem [shape: f32[8,44], index: 0, kind: input, shape index: {}]   ;;  %s1108_s4 = inlined_call_operand.vmem [shape: f32[1,128], index: 4, kind: input, shape index: {}]   ;;  %s1109_s3 = inlined_call_operand.vmem [shape: bf16[256,128], index: 3, kind: input, shape index: {}]   ;;  %s1110_s2 = inlined_call_operand.vmem [shape: f32[1,256], index: 2, kind: input, shape index: {}]   ;;  %s1111_s5 = inlined_call_operand.vmem [shape: f32[8,128], index: 5, kind: output, shape index: {}]  }
   0x1   :  { %v576_v0 = vld [vmem:[%s1106_s1 + $0xa0] sm:$0xf]  ;;  %v758_v1 = vld [vmem:[%s1106_s1 + $0xc4] sm:$0x30]  ;;  %v757_v2 = vld [vmem:[%s1106_s1 + $0xa4] sm:$0xf] }
   0x2   :  { %v577_v3 = vor.u32 %v758_v1, %v576_v0  ;;  %v578_v4 = vld [vmem:[%s1106_s1 + $0xc8] sm:$0x30]  ;;  %v602_v5 = vld [vmem:[%s1106_s1 + $0xa8] sm:$0xf]  ;;  %v764_v6 = vld [vmem:[%s1106_s1 + $0xcc] sm:$0x30] }
   0x3   :  { %v581_v7 = vor.u32 %v757_v2, %v578_v4  ;;  %v603_v8 = vor.u32 %v764_v6, %v602_v5  ;;  %v763_v9 = vld [vmem:[%s1106_s1 + $0xac] sm:$0xf]  ;;  %v604_v10 = vld [vmem:[%s1106_s1 + $0xd0] sm:$0x30]  ;;  %v568_v11 = vld [vmem:[%s1106_s1 + $0x50] sm:$0xf] }
   0x4   :  { %v63_v12 = vsel %vm61_vm0, %v577_v3, 0  ;;  %v607_v13 = vor.u32 %v763_v9, %v604_v10  ;;  %v756_v14 = vld [vmem:[%s1106_s1 + $0x74] sm:$0xf0]  ;;  %v755_v15 = vld [vmem:[%s1106_s1 + $0x54] sm:$0xf]  ;;  %v21_v29 = vld [vmem:[%s1107_s0] sm:$0xff] }
   0x5   :  { %73 = vmatpush.bf16.msra.mxu0 %v63_v12  ;;  %v66_v16 = vsel %vm61_vm0, %v581_v7, 0  ;;  %v129_v17 = vsel %vm61_vm0, %v603_v8, 0  ;;  %v569_v18 = vor.u32 %v756_v14, %v568_v11  ;;  %v570_v19 = vld [vmem:[%s1106_s1 + $0x78] sm:$0xf0]  ;;  %v594_v20 = vld [vmem:[%s1106_s1 + $0x58] sm:$0xf]  ;;  %v931_v48 = vpack.c.bf16 %v21_v29, %v21_v29 }
   0x6   :  { %86 = vmatpush.bf16.msra.mxu1 %v66_v16  ;;  %139 = vmatpush.bf16.msra.mxu2 %v129_v17  ;;  %v132_v21 = vsel %vm61_vm0, %v607_v13, 0  ;;  %v573_v22 = vor.u32 %v755_v15, %v570_v19  ;;  %v762_v23 = vld [vmem:[%s1106_s1 + $0x7c] sm:$0xf0]  ;;  %v761_v24 = vld [vmem:[%s1106_s1 + $0x5c] sm:$0xf] }
   0x7   :  { %152 = vmatpush.bf16.msra.mxu3 %v132_v21  ;;  %v595_v25 = vor.u32 %v762_v23, %v594_v20  ;;  %v596_v26 = vld [vmem:[%s1106_s1 + $0x80] sm:$0xf0]  ;;  %v560_v27 = vld [vmem:[%s1106_s1] sm:$0xf]  ;;  %v754_v28 = vld [vmem:[%s1106_s1 + $0x24] sm:$0xf0] }
   0x8   :  { %v599_v30 = vor.u32 %v761_v24, %v596_v26  ;;  %v753_v31 = vld [vmem:[%s1106_s1 + $0x4] sm:$0xf]  ;;  %v562_v32 = vld [vmem:[%s1106_s1 + $0x28] sm:$0xf0]  ;;  %v586_v33 = vld [vmem:[%s1106_s1 + $0x8] sm:$0xf]  ;;  %v561_v34 = vor.u32 %v754_v28, %v560_v27 }
   0x9   :  { %74 = vmatpush.bf16.msra.mxu0 %v569_v18  ;;  %v760_v35 = vld [vmem:[%s1106_s1 + $0x2c] sm:$0xf0]  ;;  %v759_v36 = vld [vmem:[%s1106_s1 + $0xc] sm:$0xf]  ;;  %v588_v37 = vld [vmem:[%s1106_s1 + $0x30] sm:$0xf0]  ;;  %v565_v38 = vor.u32 %v753_v31, %v562_v32 }
   0xa   :  { %87 = vmatpush.bf16.msra.mxu1 %v573_v22  ;;  %140 = vmatpush.bf16.msra.mxu2 %v595_v25  ;;  %v587_v39 = vor.u32 %v760_v35, %v586_v33  ;;  %v628_v40 = vld [vmem:[%s1106_s1 + $0xb0] sm:$0xf]  ;;  %v770_v41 = vld [vmem:[%s1106_s1 + $0xd4] sm:$0x30]  ;;  %v769_v42 = vld [vmem:[%s1106_s1 + $0xb4] sm:$0xf]  ;;  %v591_v43 = vor.u32 %v759_v36, %v588_v37 }
   0xb   :  { %153 = vmatpush.bf16.msra.mxu3 %v599_v30  ;;  %v629_v44 = vor.u32 %v770_v41, %v628_v40  ;;  %v630_v45 = vld [vmem:[%s1106_s1 + $0xd8] sm:$0x30]  ;;  %v654_v46 = vld [vmem:[%s1106_s1 + $0xb8] sm:$0xf]  ;;  %v776_v47 = vld [vmem:[%s1106_s1 + $0xdc] sm:$0x30] }
   0xc   :  { %v633_v49 = vor.u32 %v769_v42, %v630_v45  ;;  %v655_v50 = vor.u32 %v776_v47, %v654_v46  ;;  %v775_v51 = vld [vmem:[%s1106_s1 + $0xbc] sm:$0xf]  ;;  %v656_v52 = vld [vmem:[%s1106_s1 + $0xe0] sm:$0x30]  ;;  %v620_v53 = vld [vmem:[%s1106_s1 + $0x60] sm:$0xf] }
   0xd   :  { %75 = vmatpush.bf16.msra.mxu0 %v561_v34  ;;  %v197_v54 = vsel %vm61_vm0, %v629_v44, 0  ;;  %v659_v55 = vor.u32 %v775_v51, %v656_v52  ;;  %v768_v56 = vld [vmem:[%s1106_s1 + $0x84] sm:$0xf0]  ;;  %v767_v57 = vld [vmem:[%s1106_s1 + $0x64] sm:$0xf]  ;;  %v789_v40 = vld [vmem:[%s1109_s3 + $0x30] sm:$0xff] }
   0xe   :  { %88 = vmatpush.bf16.msra.mxu1 %v565_v38  ;;  %141 = vmatpush.bf16.msra.mxu2 %v587_v39  ;;  %v200_v58 = vsel %vm61_vm0, %v633_v49, 0  ;;  %v622_v59 = vld [vmem:[%s1106_s1 + $0x88] sm:$0xf0]  ;;  %v646_v60 = vld [vmem:[%s1106_s1 + $0x68] sm:$0xf]  ;;  %v265_v61 = vsel %vm61_vm0, %v655_v50, 0  ;;  %v621_v63 = vor.u32 %v768_v56, %v620_v53 }
   0xf   :  { %154 = vmatpush.bf16.msra.mxu3 %v591_v43  ;;  %v268_v62 = vsel %vm61_vm0, %v659_v55, 0  ;;  %v774_v0 = vld [vmem:[%s1106_s1 + $0x8c] sm:$0xf0]  ;;  %v773_v1 = vld [vmem:[%s1106_s1 + $0x6c] sm:$0xf]  ;;  %v625_v2 = vor.u32 %v767_v57, %v622_v59  ;;  %v790_v38 = vld [vmem:[%s1109_s3 + $0x38] sm:$0xff] }
  0x10   :  { %582 = vmatmul.msk.bf16.vlgmr.msra.gmra.mxu0 %vm57_vm1, %v931_v48  ;;  %v648_v3 = vld [vmem:[%s1106_s1 + $0x90] sm:$0xf0]  ;;  %v612_v4 = vld [vmem:[%s1106_s1 + $0x10] sm:$0xf]  ;;  %v766_v5 = vld [vmem:[%s1106_s1 + $0x34] sm:$0xf0]  ;;  %v647_v8 = vor.u32 %v774_v0, %v646_v60 }
  0x11   :  { %207 = vmatpush.bf16.msrb.mxu0 %v197_v54  ;;  %583 = vmatmul.msk.bf16.vlgmr.msra.gmra.mxu1 %vm57_vm1, %v931_v48  ;;  %v765_v6 = vld [vmem:[%s1106_s1 + $0x14] sm:$0xf]  ;;  %v614_v7 = vld [vmem:[%s1106_s1 + $0x38] sm:$0xf0]  ;;  %v638_v9 = vld [vmem:[%s1106_s1 + $0x18] sm:$0xf]  ;;  %v651_v11 = vor.u32 %v773_v1, %v648_v3  ;;  %v613_v12 = vor.u32 %v766_v5, %v612_v4 }
  0x12   :  { %220 = vmatpush.bf16.msrb.mxu1 %v200_v58  ;;  %608 = vmatmul.msk.bf16.vlgmr.msra.gmra.mxu2 %vm57_vm1, %v931_v48  ;;  %v772_v10 = vld [vmem:[%s1106_s1 + $0x3c] sm:$0xf0]  ;;  %v782_v14 = vld [vmem:[%s1106_s1 + $0xe4] sm:$0x30]  ;;  %v781_v15 = vld [vmem:[%s1106_s1 + $0xc4] sm:$0xf]  ;;  %v617_v16 = vor.u32 %v765_v6, %v614_v7 }
  0x13   :  { %609 = vmatmul.msk.bf16.vlgmr.msra.gmra.mxu3 %vm57_vm1, %v931_v48  ;;  %275 = vmatpush.bf16.msrb.mxu2 %v265_v61  ;;  %v680_v13 = vld [vmem:[%s1106_s1 + $0xc0] sm:$0xf]  ;;  %v771_v17 = vld [vmem:[%s1106_s1 + $0x1c] sm:$0xf]  ;;  %v640_v18 = vld [vmem:[%s1106_s1 + $0x40] sm:$0xf0]  ;;  %v639_v24 = vor.u32 %v772_v10, %v638_v9 }
  0x14   :  { %288 = vmatpush.bf16.msrb.mxu3 %v268_v62  ;;  %v681_v19 = vor.u32 %v782_v14, %v680_v13  ;;  %v682_v20 = vld [vmem:[%s1106_s1 + $0xe8] sm:$0x30]  ;;  %v672_v22 = vld [vmem:[%s1106_s1 + $0x70] sm:$0xf]  ;;  %v780_v23 = vld [vmem:[%s1106_s1 + $0x94] sm:$0xf0]  ;;  %v643_v28 = vor.u32 %v771_v17, %v640_v18 }
  0x15   :  { %208 = vmatpush.bf16.msrb.mxu0 %v621_v63  ;;  %v685_v21 = vor.u32 %v781_v15, %v682_v20  ;;  %v779_v26 = vld [vmem:[%s1106_s1 + $0x74] sm:$0xf]  ;;  %v674_v27 = vld [vmem:[%s1106_s1 + $0x98] sm:$0xf0]  ;;  %v673_v30 = vor.u32 %v780_v23, %v672_v22  ;;  %v664_v32 = vld [vmem:[%s1106_s1 + $0x20] sm:$0xf] }
  0x16   :  { %221 = vmatpush.bf16.msrb.mxu1 %v625_v2  ;;  %v333_v25 = vsel %vm61_vm0, %v681_v19, 0  ;;  %v677_v31 = vor.u32 %v779_v26, %v674_v27  ;;  %v778_v33 = vld [vmem:[%s1106_s1 + $0x44] sm:$0xf0]  ;;  %v777_v34 = vld [vmem:[%s1106_s1 + $0x24] sm:$0xf]  ;;  %v798_v39 = vld [vmem:[%s1109_s3 + $0x78] sm:$0xff] }
  0x17   :  { %276 = vmatpush.bf16.msrb.mxu2 %v647_v8  ;;  %v336_v29 = vsel %vm61_vm0, %v685_v21, 0  ;;  %v666_v35 = vld [vmem:[%s1106_s1 + $0x48] sm:$0xf0]  ;;  %v665_v36 = vor.u32 %v778_v33, %v664_v32  ;;  %v797_v41 = vld [vmem:[%s1109_s3 + $0x70] sm:$0xff]  ;;  %v787_v44 = vld [vmem:[%s1109_s3 + $0x20] sm:$0xff] }
  0x18   :  { %289 = vmatpush.bf16.msrb.mxu3 %v651_v11  ;;  %v669_v37 = vor.u32 %v777_v34, %v666_v35  ;;  %v788_v42 = vld [vmem:[%s1109_s3 + $0x28] sm:$0xff]  ;;  %v795_v45 = vld [vmem:[%s1109_s3 + $0x60] sm:$0xff]  ;;  %v786_v46 = vld [vmem:[%s1109_s3 + $0x18] sm:$0xff] }
  0x19   :  { %209 = vmatpush.bf16.msrb.mxu0 %v613_v12  ;;  %v796_v43 = vld [vmem:[%s1109_s3 + $0x68] sm:$0xff]  ;;  %v794_v47 = vld [vmem:[%s1109_s3 + $0x58] sm:$0xff]  ;;  %v793_v49 = vld [vmem:[%s1109_s3 + $0x50] sm:$0xff] }
  0x1a   :  { %222 = vmatpush.bf16.msrb.mxu1 %v617_v16  ;;  %v784_v51 = vld [vmem:[%s1109_s3 + $0x8] sm:$0xff]  ;;  %v783_v54 = vld [vmem:[%s1109_s3] sm:$0xff] }
  0x1b   :  { %277 = vmatpush.bf16.msrb.mxu2 %v639_v24  ;;  %v792_v52 = vld [vmem:[%s1109_s3 + $0x48] sm:$0xff]  ;;  %v791_v55 = vld [vmem:[%s1109_s3 + $0x40] sm:$0xff] }
  0x1c   :  { %290 = vmatpush.bf16.msrb.mxu3 %v643_v28  ;;  %v366_v6 = vld [vmem:[%s1110_s2] sm:$0x3] }
  0x1d   :  { %343 = vmatpush.bf16.msra.mxu0 %v333_v25  ;;  %v368_v11 = vperm.slane %v366_v6, 0  ;;  %v369_v15 = vperm.slane %v366_v6, 1  ;;  %v799_v25 = vld [vmem:[%s1108_s4] ss:$0 sm:$0xff] }
  0x1e   :  { %356 = vmatpush.bf16.msra.mxu1 %v336_v29 }
  0x1f   :  { %508 = vmatpush.bf16.msra.mxu2 %v790_v38 }
  0x20   :  { %634 = vmatmul.msk.bf16.vlgmr.msrb.gmra.mxu0 %vm57_vm1, %v931_v48  ;;  %521 = vmatpush.bf16.msra.mxu3 %v798_v39 }
  0x21   :  { %344 = vmatpush.bf16.msra.mxu0 %v673_v30  ;;  %635 = vmatmul.msk.bf16.vlgmr.msrb.gmra.mxu1 %vm57_vm1, %v931_v48 }
  0x22   :  { %357 = vmatpush.bf16.msra.mxu1 %v677_v31  ;;  %660 = vmatmul.msk.bf16.vlgmr.msrb.gmra.mxu2 %vm57_vm1, %v931_v48 }
  0x23   :  { %661 = vmatmul.msk.bf16.vlgmr.msrb.gmra.mxu3 %vm57_vm1, %v931_v48  ;;  %509 = vmatpush.bf16.msra.mxu2 %v789_v40 }
  0x24   :  { %522 = vmatpush.bf16.msra.mxu3 %v797_v41 }
  0x25   :  { %345 = vmatpush.bf16.msra.mxu0 %v665_v36 }
  0x26   :  { %358 = vmatpush.bf16.msra.mxu1 %v669_v37 }
  0x27   :  { %510 = vmatpush.bf16.msra.mxu2 %v788_v42 }
  0x28   :  { %523 = vmatpush.bf16.msra.mxu3 %v796_v43 }
  0x2b   :  { %511 = vmatpush.bf16.msra.mxu2 %v787_v44 }
  0x2c   :  { %524 = vmatpush.bf16.msra.mxu3 %v795_v45 }
  0x2f   :  { %512 = vmatpush.bf16.msra.mxu2 %v786_v46 }
  0x30   :  { %686 = vmatmul.msk.bf16.vlgmr.msra.gmra.mxu0 %vm57_vm1, %v931_v48  ;;  %525 = vmatpush.bf16.msra.mxu3 %v794_v47 }
  0x31   :  { %687 = vmatmul.msk.bf16.vlgmr.msra.gmra.mxu1 %vm57_vm1, %v931_v48  ;;  %v785_v48 = vld [vmem:[%s1109_s3 + $0x10] sm:$0xff] }
  0x33   :  { %513 = vmatpush.bf16.msra.mxu2 %v785_v48 }
  0x34   :  { %526 = vmatpush.bf16.msra.mxu3 %v793_v49 }
  0x37   :  { %514 = vmatpush.bf16.msra.mxu2 %v784_v51 }
  0x38   :  { %527 = vmatpush.bf16.msra.mxu3 %v792_v52 }
  0x3b   :  { %515 = vmatpush.bf16.msra.mxu2 %v783_v54 }
  0x3c   :  { %528 = vmatpush.bf16.msra.mxu3 %v791_v55 }
  0x8d   :  { %v77_v50 = vpop.f32.mrf.mxu0 }
  0x8e   :  { %v90_v53 = vpop.f32.mrf.mxu1 }
  0x95   :  { %v143_v56 = vpop.f32.mrf.mxu2  ;;  %v79_v58 = vpop.f32.mrf.mxu0 }
  0x96   :  { %v156_v57 = vpop.f32.mrf.mxu3  ;;  %v92_v59 = vpop.f32.mrf.mxu1  ;;  %v160_v4 = vmax.f32 %v77_v50, %v143_v56 }
  0x97   :  { %v161_v5 = vmax.f32 %v90_v53, %v156_v57 }
  0x9d   :  { %v145_v60 = vpop.f32.mrf.mxu2  ;;  %v211_v62 = vpop.f32.mrf.mxu0 }
  0x9e   :  { %v158_v61 = vpop.f32.mrf.mxu3  ;;  %v224_v63 = vpop.f32.mrf.mxu1  ;;  %v228_v7 = vmax.f32 %v160_v4, %v211_v62 }
  0x9f   :  { %v229_v8 = vmax.f32 %v161_v5, %v224_v63 }
  0xa5   :  { %v279_v0 = vpop.f32.mrf.mxu2  ;;  %v213_v2 = vpop.f32.mrf.mxu0 }
  0xa6   :  { %v292_v1 = vpop.f32.mrf.mxu3  ;;  %v226_v3 = vpop.f32.mrf.mxu1  ;;  %v296_v9 = vmax.f32 %v228_v7, %v279_v0 }
  0xa7   :  { %v297_v12 = vmax.f32 %v229_v8, %v292_v1 }
  0xad   :  { %v281_v10 = vpop.f32.mrf.mxu2  ;;  %v347_v14 = vpop.f32.mrf.mxu0 }
  0xae   :  { %v294_v13 = vpop.f32.mrf.mxu3  ;;  %v364_v16 = vmax.f32 %v296_v9, %v347_v14  ;;  %v360_v17 = vpop.f32.mrf.mxu1 }
  0xaf   :  { %v365_v18 = vmax.f32 %v297_v12, %v360_v17 }
  0xb0   :  { %v372_v19 = vadd.f32 %v368_v11, %v364_v16 }
  0xb1   :  { %v373_v20 = vadd.f32 %v369_v15, %v365_v18 }
  0xb2   :  { %v374_v21 = vpack.c.bf16 %v372_v19, %v372_v19 }
  0xb3   :  { %v375_v22 = vpack.c.bf16 %v373_v20, %v373_v20 }
  0xb4   :  { %516 = vmatmul.bf16.vlgmr.msra.gmra.mxu2 %v374_v21 }
  0xb5   :  { %529 = vmatmul.bf16.vlgmr.msra.gmra.mxu3 %v375_v22  ;;  %v349_v23 = vpop.f32.mrf.mxu0 }
  0xb6   :  { %v362_v24 = vpop.f32.mrf.mxu1 }
 0x137   :  { %v517_v26 = vpop.f32.mrf.mxu2 }
 0x138   :  { %v518_v27 = vadd.f32 %v799_v25, %v517_v26  ;;  %v530_v28 = vpop.f32.mrf.mxu3 }
 0x13a   :  { %v531_v29 = vadd.f32 %v530_v28, %v518_v27 }
 0x13c   :  { %v752_v30 = vmul.f32 -1.442695, %v531_v29 }
 0x13e   :  { %800 = vpow2.f32 %v752_v30 }
 0x13f   :  { %v519_v31 = vpop.f32.mrf.mxu2 }
 0x140   :  { %v532_v32 = vpop.f32.mrf.mxu3 }
 0x144   :  { %v801_v33 = vpop.eup %800 }
 0x145   :  { %v537_v34 = vadd.f32 1.0, %v801_v33 }
 0x147   :  { %802 = vrcp.f32 %v537_v34  ;;  %v549_v38 = vand.u32 2147483648, %v537_v34  ;;  %v547_v40 = vand.u32 2147483647, %v537_v34  ;;  %vm543_vm3 = vweird.f32 %v537_v34 }
 0x149   :  { %v550_v42 = vor.u32 1.1754944e-38, %v549_v38  ;;  %vm548_vm5 = vcmp.eq.f32.partialorder %v547_v40, 8.507059e+37 }
 0x14d   :  { %v803_v35 = vpop.eup %802 }
 0x14e   :  { %v539_v36 = vmul.f32 %v803_v35, %v537_v34  ;;  %vm544_vm2 = vweird.f32 %v803_v35 }
 0x14f   :  { %vm545_vm4 = vmor %vm543_vm3, %vm544_vm2 }
 0x150   :  { %v540_v37 = vsub.f32 1.0, %v539_v36 }
 0x152   :  { %v541_v39 = vmul.f32 %v803_v35, %v540_v37 }
 0x154   :  { %v542_v41 = vadd.f32 %v803_v35, %v541_v39 }
 0x156   :  { %v546_v43 = vsel %vm545_vm4, %v803_v35, %v542_v41 }
 0x157   :  { %v551_v44 = vsel %vm548_vm5, %v550_v42, %v546_v43 }
 0x158   :  { %553 = vst [vmem:[%s1111_s5] sm:$0xff] %v551_v44 }

</bundles_post_ra>
